<compile_context>
chip_gen: v5e
topology: v5e:2x2
jax: 0.10.0
libtpu: 0.0.40
codegen_flags: <defaults>
</compile_context>

<pallas_src>
import functools

import jax
import jax.numpy as jnp
from jax.experimental import pallas as pl
from jax.experimental.pallas import tpu as pltpu

LATENT_DIM = 100
LATENT_PAD = 128     # K of matmul-1 padded to a lane-aligned 128
HIDDEN = 128
OUT = 784            # 28 * 28, written directly (last 16-lane segment is a masked vst)


def generator_kernel(z_ref, w1_ref, b1_ref, w2_ref, b2_ref, out_ref):
    # z:  (TILE_B, 128) bf16   w1: (128, 128) bf16   b1: (1, 128) f32
    # w2: (128, 784) bf16      b2: (1, 784) f32      out: (TILE_B, 784) bf16
    h = jnp.dot(z_ref[...], w1_ref[...], preferred_element_type=jnp.float32)
    h = jnp.maximum(h + b1_ref[...], 0.0)                  # f32 bias + ReLU (VPU)
    o = jnp.dot(h.astype(jnp.bfloat16), w2_ref[...],
                preferred_element_type=jnp.float32)
    o = o + b2_ref[...]                                    # f32 bias add
    # bf16 tanh: halves EUP pushes on v6e/v7x, output stream is bf16 anyway.
    out_ref[...] = jnp.tanh(o.astype(out_ref.dtype))


def _choose_tile_b(B):
    # bf16 output -> tile must be a multiple of 16 (sublane packing).
    # Cap at 512 rows (mem-bound kernels hit ~85% of HBM roofline at 512+);
    # for moderate batches split into >= 2 grid steps so the "parallel" batch
    # axis spans both TensorCores on v7x (no-op for v5e/v6e).
    if B <= 16:
        return 16
    half = (B + 1) // 2
    tile = ((half + 15) // 16) * 16
    return min(tile, 512)


def prepare_params(w1, b1, w2, b2):
    """One-time parameter prep (hoisted out of the per-call forward):
    cast matmul operands to bf16, zero-pad w1's K dim 100 -> 128."""
    w1_b = jnp.zeros((LATENT_PAD, HIDDEN), jnp.bfloat16).at[:LATENT_DIM].set(
        w1.astype(jnp.bfloat16))
    b1_f = b1.reshape(1, HIDDEN).astype(jnp.float32)
    w2_b = w2.astype(jnp.bfloat16)
    b2_f = b2.reshape(1, OUT).astype(jnp.float32)
    return w1_b, b1_f, w2_b, b2_f


@jax.jit
def generator_forward(z, w1_b, b1_f, w2_b, b2_f):
    """z: (B, 100) f32. Returns (B, 1, 28, 28) bf16 (matches .view(-1,1,28,28))."""
    B = z.shape[0]
    tile_b = _choose_tile_b(B)
    n_tiles = pl.cdiv(B, tile_b)
    b_pad = n_tiles * tile_b

    # Batch-pad and K-pad z in one op; cast to bf16 for the MXU.
    z_p = jnp.zeros((b_pad, LATENT_PAD), jnp.bfloat16)
    z_p = z_p.at[:B, :LATENT_DIM].set(z.astype(jnp.bfloat16))

    cost = pl.CostEstimate(
        flops=2 * b_pad * (LATENT_PAD * HIDDEN + HIDDEN * OUT),
        transcendentals=b_pad * OUT,
        bytes_accessed=(z_p.size * 2 + w1_b.size * 2 + b1_f.size * 4
                        + w2_b.size * 2 + b2_f.size * 4 + b_pad * OUT * 2),
    )

    flat = pl.pallas_call(
        generator_kernel,
        out_shape=jax.ShapeDtypeStruct((b_pad, OUT), jnp.bfloat16),
        grid_spec=pltpu.PrefetchScalarGridSpec(
            num_scalar_prefetch=0,
            grid=(n_tiles,),
            in_specs=[
                pl.BlockSpec((tile_b, LATENT_PAD), lambda i: (i, 0)),
                pl.BlockSpec((LATENT_PAD, HIDDEN), lambda i: (0, 0)),
                pl.BlockSpec((1, HIDDEN), lambda i: (0, 0)),
                pl.BlockSpec((HIDDEN, OUT), lambda i: (0, 0)),
                pl.BlockSpec((1, OUT), lambda i: (0, 0)),
            ],
            out_specs=pl.BlockSpec((tile_b, OUT), lambda i: (i, 0)),
        ),
        compiler_params=pltpu.CompilerParams(
            dimension_semantics=("parallel",),
        ),
        cost_estimate=cost,
    )(z_p, w1_b, b1_f, w2_b, b2_f)

    if b_pad != B:
        flat = flat[:B]            # strip padded rows (leading-axis only)
    # Row-major contiguous -> this reshape is free, like .view(-1, 1, 28, 28).
    return flat.reshape(B, 1, 28, 28)


def init_params(key):
    # Mimics PyTorch nn.Linear default init:
    # U(-1/sqrt(fan_in), 1/sqrt(fan_in)) for weights and biases.
    k1, k2, k3, k4 = jax.random.split(key, 4)
    bound1 = 1.0 / (LATENT_DIM ** 0.5)
    bound2 = 1.0 / (HIDDEN ** 0.5)
    # Stored as (in, out) so the kernel computes x @ W (PyTorch: x @ W.T).
    w1 = jax.random.uniform(k1, (LATENT_DIM, HIDDEN), jnp.float32, -bound1, bound1)
    b1 = jax.random.uniform(k2, (HIDDEN,), jnp.float32, -bound1, bound1)
    w2 = jax.random.uniform(k3, (HIDDEN, OUT), jnp.float32, -bound2, bound2)
    b2 = jax.random.uniform(k4, (OUT,), jnp.float32, -bound2, bound2)
    return w1, b1, w2, b2


if __name__ == "__main__":
    key = jax.random.PRNGKey(0)
    pkey, zkey = jax.random.split(key)
    w1, b1, w2, b2 = init_params(pkey)
    params = prepare_params(w1, b1, w2, b2)   # one-time weight prep

    B = 8
    z = jax.random.normal(zkey, (B, LATENT_DIM), jnp.float32)

    out = generator_forward(z, *params)
    out = jax.block_until_ready(out)

    # Sanity check against pure-JAX f32 reference (tolerance covers bf16
    # matmul inputs / bf16 output; accumulation is still f32).
    ref = jnp.tanh(
        jnp.maximum(z @ w1 + b1[None, :], 0.0) @ w2 + b2[None, :]
    ).reshape(B, 1, 28, 28)
    assert out.shape == (B, 1, 28, 28)
    assert out.dtype == jnp.bfloat16
    err = float(jnp.max(jnp.abs(out.astype(jnp.float32) - ref)))
    assert err < 4e-2, err

    print("KERNEL_OK")
</pallas_src>

<mosaic_0001>
module attributes {stable_mosaic.version = 11 : i64} {
  func.func @generator_kernel(%arg0: i32, %arg1: memref<16x128xbf16, #tpu.memory_space<vmem>>, %arg2: memref<128x128xbf16, #tpu.memory_space<vmem>>, %arg3: memref<1x128xf32, #tpu.memory_space<vmem>>, %arg4: memref<128x784xbf16, #tpu.memory_space<vmem>>, %arg5: memref<1x784xf32, #tpu.memory_space<vmem>>, %arg6: memref<16x784xbf16, #tpu.memory_space<vmem>>) attributes {dimension_semantics = [#tpu.dimension_semantics<parallel>], iteration_bounds = array<i64: 1>, scalar_prefetch = 0 : i64, scratch_operands = 0 : i64, tpu.core_type = #tpu.core_type<tc>, window_params = [{transform_indices = @transform_0, window_bounds = array<i64: 16, 128>}, {pipeline_mode = #tpu.pipeline_mode<synchronous>, transform_indices = @transform_1, window_bounds = array<i64: 128, 128>}, {pipeline_mode = #tpu.pipeline_mode<synchronous>, transform_indices = @transform_2, window_bounds = array<i64: 1, 128>}, {pipeline_mode = #tpu.pipeline_mode<synchronous>, transform_indices = @transform_3, window_bounds = array<i64: 128, 784>}, {pipeline_mode = #tpu.pipeline_mode<synchronous>, transform_indices = @transform_4, window_bounds = array<i64: 1, 784>}, {transform_indices = @transform_5, window_bounds = array<i64: 16, 784>}]} {
    %c0 = arith.constant 0 : index
    %c0_0 = arith.constant 0 : index
    %0 = vector.load %arg1[%c0, %c0_0] : memref<16x128xbf16, #tpu.memory_space<vmem>>, vector<16x128xbf16>
    %c0_1 = arith.constant 0 : index
    %c0_2 = arith.constant 0 : index
    %1 = vector.load %arg2[%c0_1, %c0_2] : memref<128x128xbf16, #tpu.memory_space<vmem>>, vector<128x128xbf16>
    %cst = arith.constant dense<0.000000e+00> : vector<16x128xf32>
    %2 = tpu.matmul %0, %1, %cst {dimension_numbers = #tpu.dot_dimension_numbers<[1], [0], [0], [1], [0, 0, 1, 1], [], []>} : vector<16x128xbf16>, vector<128x128xbf16>, vector<16x128xf32> -> vector<16x128xf32>
    %c0_3 = arith.constant 0 : index
    %c0_4 = arith.constant 0 : index
    %3 = vector.load %arg3[%c0_3, %c0_4] : memref<1x128xf32, #tpu.memory_space<vmem>>, vector<1x128xf32>
    %4 = vector.broadcast %3 : vector<1x128xf32> to vector<16x128xf32>
    %5 = arith.addf %2, %4 : vector<16x128xf32>
    %cst_5 = arith.constant 0.000000e+00 : f32
    %6 = vector.broadcast %cst_5 : f32 to vector<16x128xf32>
    %7 = arith.maximumf %5, %6 : vector<16x128xf32>
    %8 = arith.truncf %7 : vector<16x128xf32> to vector<16x128xbf16>
    %c0_6 = arith.constant 0 : index
    %c0_7 = arith.constant 0 : index
    %9 = vector.load %arg4[%c0_6, %c0_7] : memref<128x784xbf16, #tpu.memory_space<vmem>>, vector<128x784xbf16>
    %cst_8 = arith.constant dense<0.000000e+00> : vector<16x784xf32>
    %10 = tpu.matmul %8, %9, %cst_8 {dimension_numbers = #tpu.dot_dimension_numbers<[1], [0], [0], [1], [0, 0, 1, 1], [], []>} : vector<16x128xbf16>, vector<128x784xbf16>, vector<16x784xf32> -> vector<16x784xf32>
    %c0_9 = arith.constant 0 : index
    %c0_10 = arith.constant 0 : index
    %11 = vector.load %arg5[%c0_9, %c0_10] : memref<1x784xf32, #tpu.memory_space<vmem>>, vector<1x784xf32>
    %12 = vector.broadcast %11 : vector<1x784xf32> to vector<16x784xf32>
    %13 = arith.addf %10, %12 : vector<16x784xf32>
    %14 = arith.truncf %13 : vector<16x784xf32> to vector<16x784xbf16>
    %15 = math.tanh %14 : vector<16x784xbf16>
    %c0_11 = arith.constant 0 : index
    %c0_12 = arith.constant 0 : index
    %16 = vector.load %arg6[%c0_11, %c0_12] : memref<16x784xbf16, #tpu.memory_space<vmem>>, vector<16x784xbf16>
    tpu.vector_store %arg6[%c0_11, %c0_12], %15 {strides = array<i32>} : memref<16x784xbf16, #tpu.memory_space<vmem>>, vector<16x784xbf16>,
    return
  }
  func.func @transform_0(%arg0: i32) -> (i32, i32) {
    %c0_i32 = arith.constant 0 : i32
    %c0_i32_0 = arith.constant 0 : i32
    return %arg0, %c0_i32 : i32, i32
  }
  func.func @transform_1(%arg0: i32) -> (i32, i32) {
    %c0_i32 = arith.constant 0 : i32
    %c0_i32_0 = arith.constant 0 : i32
    %c0_i32_1 = arith.constant 0 : i32
    return %c0_i32, %c0_i32_0 : i32, i32
  }
  func.func @transform_2(%arg0: i32) -> (i32, i32) {
    %c0_i32 = arith.constant 0 : i32
    %c0_i32_0 = arith.constant 0 : i32
    %c0_i32_1 = arith.constant 0 : i32
    return %c0_i32, %c0_i32_0 : i32, i32
  }
  func.func @transform_3(%arg0: i32) -> (i32, i32) {
    %c0_i32 = arith.constant 0 : i32
    %c0_i32_0 = arith.constant 0 : i32
    %c0_i32_1 = arith.constant 0 : i32
    return %c0_i32, %c0_i32_0 : i32, i32
  }
  func.func @transform_4(%arg0: i32) -> (i32, i32) {
    %c0_i32 = arith.constant 0 : i32
    %c0_i32_0 = arith.constant 0 : i32
    %c0_i32_1 = arith.constant 0 : i32
    return %c0_i32, %c0_i32_0 : i32, i32
  }
  func.func @transform_5(%arg0: i32) -> (i32, i32) {
    %c0_i32 = arith.constant 0 : i32
    %c0_i32_0 = arith.constant 0 : i32
    return %arg0, %c0_i32 : i32, i32
  }
}

</mosaic_0001>

<bundles_post_ra>
// kernel: generator_forward.1
= control target key start
LH: loop header
LB: loop body
LE: loop exit
PB: predicated region body
PF: predicated region fallthrough
CT: control target
= control target key end

     0   :  { %vm626_vm0 = vcmask 125952   ;;  %s1422_s1 = inlined_call_operand.vmem [shape: bf16[128,128], index: 1, kind: input, shape index: {}]   ;;  %s1423_s3 = inlined_call_operand.vmem [shape: bf16[128,784], index: 3, kind: input, shape index: {}]   ;;  %s1424_s2 = inlined_call_operand.vmem [shape: f32[1,128], index: 2, kind: input, shape index: {}]   ;;  %s1425_s0 = inlined_call_operand.vmem [shape: bf16[16,128], index: 0, kind: input, shape index: {}]   ;;  %s1426_s4 = inlined_call_operand.vmem [shape: f32[1,784], index: 4, kind: input, shape index: {}]   ;;  %s1427_s5 = inlined_call_operand.vmem [shape: bf16[16,784], index: 5, kind: output, shape index: {}]  }
   0x1   :  { %v904_v0 = vld [vmem:[%s1422_s1 + $0x38] sm:$0xff]  ;;  %v903_v1 = vld [vmem:[%s1422_s1 + $0x30] sm:$0xff]  ;;  %v870_v2 = vld [vmem:[%s1423_s3 + $0x188] sm:$0xf] }
   0x2   :  { %96 = vmatpush.bf16.msra.mxu0 %v904_v0  ;;  %v957_v3 = vld [vmem:[%s1423_s3 + $0x1a0] sm:$0xf0]  ;;  %v954_v4 = vld [vmem:[%s1423_s3 + $0x18c] sm:$0xf]  ;;  %v872_v7 = vld [vmem:[%s1423_s3 + $0x1a4] sm:$0xf0] }
   0x3   :  { %v902_v5 = vld [vmem:[%s1422_s1 + $0x28] sm:$0xff]  ;;  %v871_v6 = vor.u32 %v957_v3, %v870_v2  ;;  %v878_v8 = vld [vmem:[%s1423_s3 + $0x190] sm:$0xf]  ;;  %v875_v10 = vor.u32 %v954_v4, %v872_v7  ;;  %v947_v14 = vld [vmem:[%s1423_s3 + $0x154] sm:$0xf] }
   0x4   :  { %v958_v9 = vld [vmem:[%s1423_s3 + $0x1a8] sm:$0xf0]  ;;  %v842_v12 = vld [vmem:[%s1423_s3 + $0x150] sm:$0xf]  ;;  %v850_v17 = vld [vmem:[%s1423_s3 + $0x158] sm:$0xf] }
   0x5   :  { %v879_v11 = vor.u32 %v958_v9, %v878_v8  ;;  %v950_v13 = vld [vmem:[%s1423_s3 + $0x168] sm:$0xf0]  ;;  %481 = vmatpush.bf16.msra.mxu1 %v871_v6  ;;  %v844_v16 = vld [vmem:[%s1423_s3 + $0x16c] sm:$0xf0]  ;;  %v951_v18 = vld [vmem:[%s1423_s3 + $0x170] sm:$0xf0]  ;;  %495 = vmatpush.bf16.msra.mxu2 %v875_v10 }
   0x6   :  { %97 = vmatpush.bf16.msra.mxu0 %v903_v1  ;;  %v843_v15 = vor.u32 %v950_v13, %v842_v12  ;;  %v847_v19 = vor.u32 %v947_v14, %v844_v16  ;;  %v851_v20 = vor.u32 %v951_v18, %v850_v17  ;;  %v814_v21 = vld [vmem:[%s1423_s3 + $0x118] sm:$0xf]  ;;  %v943_v22 = vld [vmem:[%s1423_s3 + $0x130] sm:$0xf0]  ;;  %v940_v23 = vld [vmem:[%s1423_s3 + $0x11c] sm:$0xf] }
   0x7   :  { %509 = vmatpush.bf16.msra.mxu3 %v879_v11  ;;  %v816_v24 = vld [vmem:[%s1423_s3 + $0x134] sm:$0xf0]  ;;  %v822_v25 = vld [vmem:[%s1423_s3 + $0x120] sm:$0xf]  ;;  %v944_v26 = vld [vmem:[%s1423_s3 + $0x138] sm:$0xf0]  ;;  %v815_v28 = vor.u32 %v943_v22, %v814_v21 }
   0x8   :  { %v901_v27 = vld [vmem:[%s1422_s1 + $0x20] sm:$0xff]  ;;  %v819_v29 = vor.u32 %v940_v23, %v816_v24  ;;  %v823_v30 = vor.u32 %v944_v26, %v822_v25  ;;  %v936_v32 = vld [vmem:[%s1423_s3 + $0xf8] sm:$0xf0]  ;;  %v794_v35 = vld [vmem:[%s1423_s3 + $0xe8] sm:$0xf] }
   0x9   :  { %482 = vmatpush.bf16.msra.mxu1 %v843_v15  ;;  %496 = vmatpush.bf16.msra.mxu2 %v847_v19  ;;  %v786_v31 = vld [vmem:[%s1423_s3 + $0xe0] sm:$0xf]  ;;  %v933_v33 = vld [vmem:[%s1423_s3 + $0xe4] sm:$0xf]  ;;  %v900_v37 = vld [vmem:[%s1422_s1 + $0x18] sm:$0xff] }
   0xa   :  { %98 = vmatpush.bf16.msra.mxu0 %v902_v5  ;;  %v788_v34 = vld [vmem:[%s1423_s3 + $0xfc] sm:$0xf0]  ;;  %v937_v36 = vld [vmem:[%s1423_s3 + $0x100] sm:$0xf0]  ;;  %v787_v38 = vor.u32 %v936_v32, %v786_v31  ;;  %v758_v41 = vld [vmem:[%s1423_s3 + $0xa8] sm:$0xf] }
   0xb   :  { %510 = vmatpush.bf16.msra.mxu3 %v851_v20  ;;  %v791_v39 = vor.u32 %v933_v33, %v788_v34  ;;  %v795_v40 = vor.u32 %v937_v36, %v794_v35  ;;  %v929_v42 = vld [vmem:[%s1423_s3 + $0xc0] sm:$0xf0]  ;;  %v926_v43 = vld [vmem:[%s1423_s3 + $0xac] sm:$0xf]  ;;  %v760_v44 = vld [vmem:[%s1423_s3 + $0xc4] sm:$0xf0] }
   0xc   :  { %v766_v45 = vld [vmem:[%s1423_s3 + $0xb0] sm:$0xf]  ;;  %v930_v46 = vld [vmem:[%s1423_s3 + $0xc8] sm:$0xf0]  ;;  %v759_v48 = vor.u32 %v929_v42, %v758_v41  ;;  %v763_v49 = vor.u32 %v926_v43, %v760_v44  ;;  %v919_v53 = vld [vmem:[%s1423_s3 + $0x74] sm:$0xf] }
   0xd   :  { %483 = vmatpush.bf16.msra.mxu1 %v815_v28  ;;  %497 = vmatpush.bf16.msra.mxu2 %v819_v29  ;;  %v899_v47 = vld [vmem:[%s1422_s1 + $0x10] sm:$0xff]  ;;  %v767_v50 = vor.u32 %v930_v46, %v766_v45  ;;  %v922_v52 = vld [vmem:[%s1423_s3 + $0x88] sm:$0xf0]  ;;  %v738_v55 = vld [vmem:[%s1423_s3 + $0x78] sm:$0xf] }
   0xe   :  { %99 = vmatpush.bf16.msra.mxu0 %v901_v27  ;;  %v730_v51 = vld [vmem:[%s1423_s3 + $0x70] sm:$0xf]  ;;  %v923_v56 = vld [vmem:[%s1423_s3 + $0x90] sm:$0xf0]  ;;  %v898_v57 = vld [vmem:[%s1422_s1 + $0x8] sm:$0xff] }
   0xf   :  { %511 = vmatpush.bf16.msra.mxu3 %v823_v30  ;;  %v732_v54 = vld [vmem:[%s1423_s3 + $0x8c] sm:$0xf0]  ;;  %v731_v58 = vor.u32 %v922_v52, %v730_v51  ;;  %v955_v59 = vld [vmem:[%s1423_s3 + $0x194] sm:$0xf]  ;;  %v739_v61 = vor.u32 %v923_v56, %v738_v55  ;;  %v702_v62 = vld [vmem:[%s1423_s3 + $0x38] sm:$0xf] }
  0x10   :  { %v735_v60 = vor.u32 %v919_v53, %v732_v54  ;;  %v915_v63 = vld [vmem:[%s1423_s3 + $0x50] sm:$0xf0]  ;;  %v880_v0 = vld [vmem:[%s1423_s3 + $0x1ac] sm:$0xf0]  ;;  %v912_v1 = vld [vmem:[%s1423_s3 + $0x3c] sm:$0xf] }
  0x11   :  { %484 = vmatpush.bf16.msra.mxu1 %v787_v38  ;;  %498 = vmatpush.bf16.msra.mxu2 %v791_v39  ;;  %v704_v2 = vld [vmem:[%s1423_s3 + $0x54] sm:$0xf0]  ;;  %v710_v3 = vld [vmem:[%s1423_s3 + $0x40] sm:$0xf]  ;;  %v916_v4 = vld [vmem:[%s1423_s3 + $0x58] sm:$0xf0]  ;;  %v703_v6 = vor.u32 %v915_v63, %v702_v62  ;;  %v883_v7 = vor.u32 %v955_v59, %v880_v0 }
  0x12   :  { %100 = vmatpush.bf16.msra.mxu0 %v900_v37  ;;  %v897_v5 = vld [vmem:[%s1422_s1] sm:$0xff]  ;;  %v948_v8 = vld [vmem:[%s1423_s3 + $0x15c] sm:$0xf]  ;;  %v707_v9 = vor.u32 %v912_v1, %v704_v2  ;;  %v852_v12 = vld [vmem:[%s1423_s3 + $0x174] sm:$0xf0]  ;;  %v711_v13 = vor.u32 %v916_v4, %v710_v3 }
  0x13   :  { %512 = vmatpush.bf16.msra.mxu3 %v795_v40  ;;  %v674_v10 = vld [vmem:[%s1423_s3] sm:$0xf]  ;;  %v908_v11 = vld [vmem:[%s1423_s3 + $0x18] sm:$0xf0]  ;;  %v905_v14 = vld [vmem:[%s1423_s3 + $0x4] sm:$0xf]  ;;  %v855_v20 = vor.u32 %v948_v8, %v852_v12 }
  0x14   :  { %v676_v15 = vld [vmem:[%s1423_s3 + $0x1c] sm:$0xf0]  ;;  %v682_v17 = vld [vmem:[%s1423_s3 + $0x8] sm:$0xf]  ;;  %v909_v18 = vld [vmem:[%s1423_s3 + $0x20] sm:$0xf0]  ;;  %v675_v19 = vor.u32 %v908_v11, %v674_v10 }
  0x15   :  { %485 = vmatpush.bf16.msra.mxu1 %v759_v48  ;;  %499 = vmatpush.bf16.msra.mxu2 %v763_v49  ;;  %v896_v16 = vld [vmem:[%s1425_s0] sm:$0xff]  ;;  %v679_v21 = vor.u32 %v905_v14, %v676_v15  ;;  %v683_v24 = vor.u32 %v909_v18, %v682_v17  ;;  %v934_v26 = vld [vmem:[%s1423_s3 + $0xec] sm:$0xf]  ;;  %v796_v27 = vld [vmem:[%s1423_s3 + $0x104] sm:$0xf0] }
  0x16   :  { %101 = vmatpush.bf16.msra.mxu0 %v899_v47  ;;  %v941_v22 = vld [vmem:[%s1423_s3 + $0x124] sm:$0xf]  ;;  %v824_v23 = vld [vmem:[%s1423_s3 + $0x13c] sm:$0xf0]  ;;  %v799_v28 = vor.u32 %v934_v26, %v796_v27  ;;  %v927_v29 = vld [vmem:[%s1423_s3 + $0xb4] sm:$0xf] }
  0x17   :  { %513 = vmatpush.bf16.msra.mxu3 %v767_v50  ;;  %v827_v25 = vor.u32 %v941_v22, %v824_v23  ;;  %v768_v30 = vld [vmem:[%s1423_s3 + $0xcc] sm:$0xf0]  ;;  %v886_v31 = vld [vmem:[%s1423_s3 + $0x198] sm:$0xf]  ;;  %v959_v33 = vld [vmem:[%s1423_s3 + $0x1b0] sm:$0xf0] }
  0x18   :  { %v771_v32 = vor.u32 %v927_v29, %v768_v30  ;;  %v956_v34 = vld [vmem:[%s1423_s3 + $0x19c] sm:$0xf]  ;;  %v888_v35 = vld [vmem:[%s1423_s3 + $0x1b4] sm:$0xf0]  ;;  %v887_v36 = vor.u32 %v959_v33, %v886_v31  ;;  %v894_v38 = vld [vmem:[%s1423_s3 + $0x1a0] sm:$0xf] }
  0x19   :  { %486 = vmatpush.bf16.msra.mxu1 %v731_v58  ;;  %500 = vmatpush.bf16.msra.mxu2 %v735_v60  ;;  %v891_v37 = vor.u32 %v956_v34, %v888_v35  ;;  %v960_v39 = vld [vmem:[%s1423_s3 + $0x1b8] sm:$0xf0]  ;;  %v740_v42 = vld [vmem:[%s1423_s3 + $0x94] sm:$0xf0]  ;;  %v858_v43 = vld [vmem:[%s1423_s3 + $0x160] sm:$0xf] }
  0x1a   :  { %102 = vmatpush.bf16.msra.mxu0 %v898_v57  ;;  %v895_v40 = vor.u32 %v960_v39, %v894_v38  ;;  %v920_v41 = vld [vmem:[%s1423_s3 + $0x7c] sm:$0xf]  ;;  %v949_v46 = vld [vmem:[%s1423_s3 + $0x164] sm:$0xf]  ;;  %v860_v47 = vld [vmem:[%s1423_s3 + $0x17c] sm:$0xf0] }
  0x1b   :  { %514 = vmatpush.bf16.msra.mxu3 %v739_v61  ;;  %v743_v44 = vor.u32 %v920_v41, %v740_v42  ;;  %v952_v45 = vld [vmem:[%s1423_s3 + $0x178] sm:$0xf0]  ;;  %v863_v49 = vor.u32 %v949_v46, %v860_v47  ;;  %v866_v50 = vld [vmem:[%s1423_s3 + $0x168] sm:$0xf]  ;;  %v953_v51 = vld [vmem:[%s1423_s3 + $0x180] sm:$0xf0] }
  0x1c   :  { %v859_v48 = vor.u32 %v952_v45, %v858_v43  ;;  %v867_v52 = vor.u32 %v953_v51, %v866_v50  ;;  %v913_v53 = vld [vmem:[%s1423_s3 + $0x44] sm:$0xf]  ;;  %v712_v54 = vld [vmem:[%s1423_s3 + $0x5c] sm:$0xf0]  ;;  %v830_v55 = vld [vmem:[%s1423_s3 + $0x128] sm:$0xf] }
  0x1d   :  { %487 = vmatpush.bf16.msra.mxu1 %v703_v6  ;;  %501 = vmatpush.bf16.msra.mxu2 %v707_v9  ;;  %v715_v56 = vor.u32 %v913_v53, %v712_v54  ;;  %v945_v57 = vld [vmem:[%s1423_s3 + $0x140] sm:$0xf0]  ;;  %v942_v58 = vld [vmem:[%s1423_s3 + $0x12c] sm:$0xf]  ;;  %v832_v59 = vld [vmem:[%s1423_s3 + $0x144] sm:$0xf0] }
  0x1e   :  { %103 = vmatpush.bf16.msra.mxu0 %v897_v5  ;;  %v831_v60 = vor.u32 %v945_v57, %v830_v55  ;;  %v835_v61 = vor.u32 %v942_v58, %v832_v59  ;;  %v838_v62 = vld [vmem:[%s1423_s3 + $0x130] sm:$0xf]  ;;  %v946_v63 = vld [vmem:[%s1423_s3 + $0x148] sm:$0xf0]  ;;  %v684_v2 = vld [vmem:[%s1423_s3 + $0x24] sm:$0xf0] }
  0x1f   :  { %515 = vmatpush.bf16.msra.mxu3 %v711_v13  ;;  %v839_v0 = vor.u32 %v946_v63, %v838_v62  ;;  %v906_v1 = vld [vmem:[%s1423_s3 + $0xc] sm:$0xf]  ;;  %v802_v3 = vld [vmem:[%s1423_s3 + $0xf0] sm:$0xf]  ;;  %v935_v6 = vld [vmem:[%s1423_s3 + $0xf4] sm:$0xf] }
  0x20   :  { %v687_v4 = vor.u32 %v906_v1, %v684_v2  ;;  %v938_v5 = vld [vmem:[%s1423_s3 + $0x108] sm:$0xf0]  ;;  %v810_v10 = vld [vmem:[%s1423_s3 + $0xf8] sm:$0xf]  ;;  %v939_v11 = vld [vmem:[%s1423_s3 + $0x110] sm:$0xf0] }
  0x21   :  { %104 = vmatmul.bf16.vlgmr.msra.gmra.mxu0 %v896_v16  ;;  %488 = vmatpush.bf16.msra.mxu1 %v675_v19  ;;  %v803_v8 = vor.u32 %v938_v5, %v802_v3  ;;  %v811_v12 = vor.u32 %v939_v11, %v810_v10  ;;  %v774_v13 = vld [vmem:[%s1423_s3 + $0xb8] sm:$0xf]  ;;  %v931_v14 = vld [vmem:[%s1423_s3 + $0xd0] sm:$0xf0]  ;;  %v928_v15 = vld [vmem:[%s1423_s3 + $0xbc] sm:$0xf] }
  0x22   :  { %523 = vmatpush.bf16.msrb.mxu0 %v883_v7  ;;  %502 = vmatpush.bf16.msra.mxu2 %v679_v21  ;;  %v804_v7 = vld [vmem:[%s1423_s3 + $0x10c] sm:$0xf0]  ;;  %v775_v16 = vor.u32 %v931_v14, %v774_v13  ;;  %v776_v17 = vld [vmem:[%s1423_s3 + $0xd4] sm:$0xf0]  ;;  %v782_v18 = vld [vmem:[%s1423_s3 + $0xc0] sm:$0xf] }
  0x23   :  { %516 = vmatpush.bf16.msra.mxu3 %v683_v24  ;;  %v807_v9 = vor.u32 %v935_v6, %v804_v7  ;;  %v932_v19 = vld [vmem:[%s1423_s3 + $0xd8] sm:$0xf0]  ;;  %v746_v22 = vld [vmem:[%s1423_s3 + $0x80] sm:$0xf]  ;;  %v921_v24 = vld [vmem:[%s1423_s3 + $0x84] sm:$0xf] }
  0x24   :  { %v783_v21 = vor.u32 %v932_v19, %v782_v18  ;;  %v924_v23 = vld [vmem:[%s1423_s3 + $0x98] sm:$0xf0]  ;;  %v748_v26 = vld [vmem:[%s1423_s3 + $0x9c] sm:$0xf0]  ;;  %v754_v27 = vld [vmem:[%s1423_s3 + $0x88] sm:$0xf] }
  0x25   :  { %537 = vmatpush.bf16.msrb.mxu1 %v887_v36  ;;  %v751_v29 = vor.u32 %v921_v24, %v748_v26  ;;  %v718_v31 = vld [vmem:[%s1423_s3 + $0x48] sm:$0xf]  ;;  %v914_v33 = vld [vmem:[%s1423_s3 + $0x4c] sm:$0xf]  ;;  %v726_v35 = vld [vmem:[%s1423_s3 + $0x50] sm:$0xf] }
  0x26   :  { %524 = vmatpush.bf16.msrb.mxu0 %v855_v20  ;;  %551 = vmatpush.bf16.msrb.mxu2 %v891_v37  ;;  %v779_v20 = vor.u32 %v928_v15, %v776_v17  ;;  %v720_v34 = vld [vmem:[%s1423_s3 + $0x64] sm:$0xf0]  ;;  %v918_v36 = vld [vmem:[%s1423_s3 + $0x68] sm:$0xf0]  ;;  %v907_v42 = vld [vmem:[%s1423_s3 + $0x14] sm:$0xf] }
  0x27   :  { %565 = vmatpush.bf16.msrb.mxu3 %v895_v40  ;;  %v723_v38 = vor.u32 %v914_v33, %v720_v34  ;;  %v727_v39 = vor.u32 %v918_v36, %v726_v35  ;;  %v690_v40 = vld [vmem:[%s1423_s3 + $0x10] sm:$0xf]  ;;  %v910_v41 = vld [vmem:[%s1423_s3 + $0x28] sm:$0xf0]  ;;  %v911_v45 = vld [vmem:[%s1423_s3 + $0x30] sm:$0xf0] }
  0x28   :  { %v692_v43 = vld [vmem:[%s1423_s3 + $0x2c] sm:$0xf0]  ;;  %v691_v46 = vor.u32 %v910_v41, %v690_v40  ;;  %v961_v50 = vld [vmem:[%s1424_s2] ss:$0 sm:$0xff] }
  0x29   :  { %538 = vmatpush.bf16.msrb.mxu1 %v859_v48  ;;  %v695_v47 = vor.u32 %v907_v42, %v692_v43  ;;  %v1389_v57 = vld [vmem:[%s1426_s4] sm:$0x7f] }
  0x2a   :  { %525 = vmatpush.bf16.msrb.mxu0 %v827_v25  ;;  %552 = vmatpush.bf16.msrb.mxu2 %v863_v49  ;;  %v747_v25 = vor.u32 %v924_v23, %v746_v22  ;;  %v179_v59 = vperm.slane %v1389_v57, 0  ;;  %v182_v62 = vperm.slane %v1389_v57, 3  ;;  %v181_v63 = vperm.slane %v1389_v57, 2 }
  0x2b   :  { %566 = vmatpush.bf16.msrb.mxu3 %v867_v52  ;;  %v183_v26 = vperm.slane %v1389_v57, 4 }
  0x2d   :  { %539 = vmatpush.bf16.msrb.mxu1 %v831_v60 }
  0x2e   :  { %526 = vmatpush.bf16.msrb.mxu0 %v799_v28  ;;  %553 = vmatpush.bf16.msrb.mxu2 %v835_v61  ;;  %v925_v28 = vld [vmem:[%s1423_s3 + $0xa0] sm:$0xf0]  ;;  %v180_v61 = vperm.slane %v1389_v57, 1 }
  0x2f   :  { %567 = vmatpush.bf16.msrb.mxu3 %v839_v0  ;;  %v755_v30 = vor.u32 %v925_v28, %v754_v27  ;;  %v184_v27 = vperm.slane %v1389_v57, 5 }
  0x31   :  { %540 = vmatpush.bf16.msrb.mxu1 %v803_v8 }
  0x32   :  { %527 = vmatpush.bf16.msrb.mxu0 %v771_v32  ;;  %554 = vmatpush.bf16.msrb.mxu2 %v807_v9  ;;  %v917_v32 = vld [vmem:[%s1423_s3 + $0x60] sm:$0xf0] }
  0x33   :  { %568 = vmatpush.bf16.msrb.mxu3 %v811_v12  ;;  %v719_v37 = vor.u32 %v917_v32, %v718_v31  ;;  %v185_v31 = vperm.slane %v1389_v57, 6 }
  0x35   :  { %541 = vmatpush.bf16.msrb.mxu1 %v775_v16 }
  0x36   :  { %528 = vmatpush.bf16.msrb.mxu0 %v743_v44  ;;  %555 = vmatpush.bf16.msrb.mxu2 %v779_v20  ;;  %v698_v44 = vld [vmem:[%s1423_s3 + $0x18] sm:$0xf] }
  0x37   :  { %569 = vmatpush.bf16.msrb.mxu3 %v783_v21  ;;  %v699_v48 = vor.u32 %v911_v45, %v698_v44 }
  0x39   :  { %542 = vmatpush.bf16.msrb.mxu1 %v747_v25 }
  0x3a   :  { %529 = vmatpush.bf16.msrb.mxu0 %v715_v56  ;;  %556 = vmatpush.bf16.msrb.mxu2 %v751_v29 }
  0x3b   :  { %570 = vmatpush.bf16.msrb.mxu3 %v755_v30 }
  0x3d   :  { %543 = vmatpush.bf16.msrb.mxu1 %v719_v37 }
  0x3e   :  { %530 = vmatpush.bf16.msrb.mxu0 %v687_v4  ;;  %557 = vmatpush.bf16.msrb.mxu2 %v723_v38 }
  0x3f   :  { %571 = vmatpush.bf16.msrb.mxu3 %v727_v39 }
  0x41   :  { %544 = vmatpush.bf16.msrb.mxu1 %v691_v46 }
  0x42   :  { %558 = vmatpush.bf16.msrb.mxu2 %v695_v47 }
  0x43   :  { %572 = vmatpush.bf16.msrb.mxu3 %v699_v48 }
  0x9e   :  { %v105_v49 = vpop.f32.mrf.mxu0 }
  0x9f   :  { %v106_v51 = vadd.f32 %v961_v50, %v105_v49 }
  0xa1   :  { %v110_v54 = vmax.f32 %v106_v51, 0.0 }
  0xa6   :  { %v107_v52 = vpop.f32.mrf.mxu0 }
  0xa7   :  { %v108_v53 = vadd.f32 %v961_v50, %v107_v52 }
  0xa9   :  { %v111_v55 = vmax.f32 %v108_v53, 0.0 }
  0xab   :  { %v112_v56 = vpack.c.bf16 %v111_v55, %v110_v54 }
  0xad   :  { %489 = vmatmul.bf16.vlgmr.msra.gmra.mxu1 %v112_v56  ;;  %503 = vmatmul.bf16.vlgmr.msra.gmra.mxu2 %v112_v56 }
  0xae   :  { %517 = vmatmul.bf16.vlgmr.msra.gmra.mxu3 %v112_v56  ;;  %531 = vmatmul.bf16.vlgmr.msrb.gmra.mxu0 %v112_v56 }
  0xbd   :  { %545 = vmatmul.bf16.vlgmr.msrb.gmra.mxu1 %v112_v56  ;;  %559 = vmatmul.bf16.vlgmr.msrb.gmra.mxu2 %v112_v56 }
  0xbe   :  { %573 = vmatmul.bf16.vlgmr.msrb.gmra.mxu3 %v112_v56 }
 0x12a   :  { %v490_v58 = vpop.f32.mrf.mxu1 }
 0x12b   :  { %v532_v60 = vpop.f32.mrf.mxu0  ;;  %v491_v1 = vadd.f32 %v490_v58, %v179_v59 }
 0x12c   :  { %v533_v4 = vadd.f32 %v532_v60, %v182_v62 }
 0x130   :  { %v504_v0 = vpop.f32.mrf.mxu2 }
 0x131   :  { %v505_v2 = vadd.f32 %v504_v0, %v180_v61  ;;  %v518_v3 = vpop.f32.mrf.mxu3 }
 0x132   :  { %v519_v5 = vadd.f32 %v518_v3, %v181_v63  ;;  %v492_v6 = vpop.f32.mrf.mxu1 }
 0x133   :  { %v579_v7 = vpack.c.bf16 %v505_v2, %v491_v1  ;;  %v534_v13 = vpop.f32.mrf.mxu0  ;;  %v493_v15 = vadd.f32 %v492_v6, %v179_v59 }
 0x134   :  { %v580_v8 = vpack.c.bf16 %v533_v4, %v519_v5  ;;  %v535_v18 = vadd.f32 %v534_v13, %v182_v62 }
 0x135   :  { %v587_v9 = vunpack.c.l.bf16 %v579_v7  ;;  %v588_v10 = vunpack.c.h.bf16 %v579_v7 }
 0x136   :  { %v589_v11 = vunpack.c.l.bf16 %v580_v8  ;;  %v590_v12 = vunpack.c.h.bf16 %v580_v8 }
 0x137   :  { %962 = vtanh.f32 %v587_v9 }
 0x138   :  { %964 = vtanh.f32 %v588_v10  ;;  %v506_v14 = vpop.f32.mrf.mxu2 }
 0x139   :  { %966 = vtanh.f32 %v589_v11  ;;  %v507_v16 = vadd.f32 %v506_v14, %v180_v61  ;;  %v520_v17 = vpop.f32.mrf.mxu3 }
 0x13a   :  { %968 = vtanh.f32 %v590_v12  ;;  %v521_v19 = vadd.f32 %v520_v17, %v181_v63  ;;  %v546_v22 = vpop.f32.mrf.mxu1 }
 0x13b   :  { %v583_v20 = vpack.c.bf16 %v507_v16, %v493_v15  ;;  %v547_v37 = vadd.f32 %v546_v22, %v183_v26 }
 0x13c   :  { %v584_v21 = vpack.c.bf16 %v535_v18, %v521_v19 }
 0x13d   :  { %v963_v23 = vpop.eup %962  ;;  %v594_v24 = vunpack.c.l.bf16 %v583_v20  ;;  %v595_v25 = vunpack.c.h.bf16 %v583_v20 }
 0x13e   :  { %v965_v28 = vpop.eup %964  ;;  %v596_v29 = vunpack.c.l.bf16 %v584_v21  ;;  %v597_v30 = vunpack.c.h.bf16 %v584_v21 }
 0x13f   :  { %v967_v32 = vpop.eup %966  ;;  %v615_v33 = vpack.c.bf16 %v965_v28, %v963_v23  ;;  %970 = vtanh.f32 %v594_v24 }
 0x140   :  { %v969_v34 = vpop.eup %968  ;;  %972 = vtanh.f32 %v595_v25  ;;  %v560_v35 = vpop.f32.mrf.mxu2 }
 0x141   :  { %623 = vst [vmem:[%s1427_s5] sm:$0xff] %v615_v33  ;;  %v616_v36 = vpack.c.bf16 %v969_v34, %v967_v32  ;;  %974 = vtanh.f32 %v596_v29  ;;  %v561_v38 = vadd.f32 %v560_v35, %v184_v27  ;;  %v574_v39 = vpop.f32.mrf.mxu3 }
 0x142   :  { %976 = vtanh.f32 %v597_v30  ;;  %v575_v40 = vadd.f32 %v574_v39, %v185_v31  ;;  %v548_v48 = vpop.f32.mrf.mxu1 }
 0x143   :  { %624 = vst [vmem:[%s1427_s5 + $0x8] sm:$0xff] %v616_v36  ;;  %v581_v41 = vpack.c.bf16 %v561_v38, %v547_v37  ;;  %v549_v54 = vadd.f32 %v548_v48, %v183_v26 }
 0x144   :  { %v582_v42 = vpack.c.bf16 %v575_v40, %v575_v40 }
 0x145   :  { %v971_v43 = vpop.eup %970  ;;  %v591_v44 = vunpack.c.l.bf16 %v581_v41  ;;  %v592_v45 = vunpack.c.h.bf16 %v581_v41 }
 0x146   :  { %v973_v46 = vpop.eup %972  ;;  %v593_v47 = vunpack.c.l.bf16 %v582_v42 }
 0x147   :  { %v975_v49 = vpop.eup %974  ;;  %v619_v50 = vpack.c.bf16 %v973_v46, %v971_v43  ;;  %978 = vtanh.f32 %v591_v44 }
 0x148   :  { %v977_v51 = vpop.eup %976  ;;  %980 = vtanh.f32 %v592_v45  ;;  %v562_v52 = vpop.f32.mrf.mxu2 }
 0x149   :  { %628 = vst [vmem:[%s1427_s5 + $0x1c] sm:$0xff] %v619_v50  ;;  %v620_v53 = vpack.c.bf16 %v977_v51, %v975_v49  ;;  %982 = vtanh.f32 %v593_v47  ;;  %v563_v55 = vadd.f32 %v562_v52, %v184_v27  ;;  %v576_v56 = vpop.f32.mrf.mxu3 }
 0x14a   :  { %v577_v57 = vadd.f32 %v576_v56, %v185_v31 }
 0x14b   :  { %629 = vst [vmem:[%s1427_s5 + $0x24] sm:$0xff] %v620_v53  ;;  %v585_v58 = vpack.c.bf16 %v563_v55, %v549_v54 }
 0x14c   :  { %v586_v59 = vpack.c.bf16 %v577_v57, %v577_v57 }
 0x14d   :  { %v979_v60 = vpop.eup %978  ;;  %v598_v61 = vunpack.c.l.bf16 %v585_v58  ;;  %v599_v62 = vunpack.c.h.bf16 %v585_v58 }
 0x14e   :  { %v981_v63 = vpop.eup %980  ;;  %v600_v0 = vunpack.c.l.bf16 %v586_v59 }
 0x14f   :  { %v983_v1 = vpop.eup %982  ;;  %v617_v2 = vpack.c.bf16 %v981_v63, %v979_v60  ;;  %984 = vtanh.f32 %v598_v61 }
 0x150   :  { %v618_v3 = vpack.c.bf16 %v983_v1, %v983_v1  ;;  %986 = vtanh.f32 %v599_v62 }
 0x151   :  { %625 = vst [vmem:[%s1427_s5 + $0x10] sm:$0xff] %v617_v2  ;;  %988 = vtanh.f32 %v600_v0 }
 0x152   :  { %627 = vst.msk [vmem:[%s1427_s5 + $0x18] sm:$0xf] %vm626_vm0, %v618_v3 }
 0x155   :  { %v985_v4 = vpop.eup %984 }
 0x156   :  { %v987_v5 = vpop.eup %986 }
 0x157   :  { %v989_v6 = vpop.eup %988  ;;  %v621_v7 = vpack.c.bf16 %v987_v5, %v985_v4 }
 0x158   :  { %v622_v8 = vpack.c.bf16 %v989_v6, %v989_v6 }
 0x159   :  { %630 = vst [vmem:[%s1427_s5 + $0x2c] sm:$0xff] %v621_v7 }
 0x15a   :  { %631 = vst.msk [vmem:[%s1427_s5 + $0x34] sm:$0xf] %vm626_vm0, %v622_v8 }

</bundles_post_ra>
